<compile_context>
chip_gen: v7x
topology: tpu7x:2x2x1
jax: 0.10.0
libtpu: 0.0.40
codegen_flags: <defaults>
</compile_context>

<pallas_src>
import math
from itertools import accumulate

import jax
import jax.numpy as jnp
from jax.experimental import pallas as pl
from jax.experimental.pallas import tpu as pltpu

LANE = 128


def _round_up(x, m):
    return ((x + m - 1) // m) * m


# ---------------------------- Pallas kernel ----------------------------------
def _make_hypernet_kernel(num_linears):
    """Fused kernel for `num_linears` linear layers.

    Ref order: (x_ref, w0_ref, b0_ref, w1_ref, b1_ref, ..., out_ref).
    Layer 0 is `first_linear` (+ the separate `first_bias`); every subsequent
    layer is preceded by tanh, matching Hypernet.forward.
    """

    def kernel(*refs):
        x_ref = refs[0]
        out_ref = refs[-1]
        wb = refs[1:-1]                       # interleaved (w, b) refs

        w0 = wb[0][...]
        # first_bias + first_linear(decoder_input); MXU in weight dtype, f32 acc.
        h = jnp.dot(x_ref[...].astype(w0.dtype), w0,
                    preferred_element_type=jnp.float32) + wb[1][...]

        for i in range(1, num_linears):
            w = wb[2 * i][...]
            h = jnp.tanh(h)                   # f32 tanh -> EUP slot
            h = jnp.dot(h.astype(w.dtype), w,
                        preferred_element_type=jnp.float32) + wb[2 * i + 1][...]

        out_ref[...] = h.astype(out_ref.dtype)

    return kernel


# ------------------------------ wrapper ---------------------------------------
def hypernet_forward(decoder_input, params, param_slices, *,
                     b_tile=None, compute_dtype=jnp.bfloat16):
    """Fused Pallas forward. Returns a tuple of (B, size) f32 arrays, one per slice."""
    B, d_in = decoder_input.shape
    weights = [w.astype(compute_dtype) for w in params["weights"]]
    biases = [b.astype(jnp.float32) for b in params["biases"]]
    out_size = params["weights"][-1].shape[1]

    # --- lane-dense output: zero-pad last layer to a multiple of 128 lanes ----
    out_pad = max(LANE, _round_up(out_size, LANE))
    if out_pad != out_size:
        weights[-1] = jnp.pad(weights[-1], ((0, 0), (0, out_pad - out_size)))
        biases[-1] = jnp.pad(biases[-1], ((0, 0), (0, out_pad - out_size)))

    # --- batch tiling (pad batch so any B works) -------------------------------
    if b_tile is None:
        b_tile = B if B <= 256 else 256       # 256 fills the v6e/v7x MXU height
    b_pad = _round_up(B, b_tile)
    x = decoder_input.astype(jnp.float32)
    if b_pad != B:
        x = jnp.pad(x, ((0, b_pad - B), (0, 0)))
    grid = (b_pad // b_tile,)

    flat_args = []
    for w, b in zip(weights, biases):
        flat_args += [w, b]

    # --- cost estimate ----------------------------------------------------------
    layer_dims = [(d_in, weights[0].shape[1])] + [w.shape for w in weights[1:]]
    flops = 2 * b_pad * sum(k * n for k, n in layer_dims)
    transcendentals = b_pad * sum(w.shape[0] for w in weights[1:])
    bytes_accessed = (x.size * x.dtype.itemsize
                      + sum(a.size * a.dtype.itemsize for a in flat_args)
                      + b_pad * out_pad * 4)
    cost = pl.CostEstimate(flops=flops, transcendentals=transcendentals,
                           bytes_accessed=bytes_accessed)

    # --- explicit VMEM budget (safe on v5e 16 MiB scoped default, v7x 64 MiB) --
    const_bytes = sum(a.size * a.dtype.itemsize for a in flat_args)
    tile_bytes = 2 * (b_tile * d_in * 4 + b_tile * out_pad * 4)  # double-buffered tiles
    vmem_limit = int(min(64 << 20, max(32 << 20, 2 * (const_bytes + tile_bytes) + (4 << 20))))

    cparams = pltpu.CompilerParams(
        dimension_semantics=("parallel",),
        vmem_limit_bytes=vmem_limit,
    )

    def build_in_specs(single_buffer_consts):
        const_kwargs = (dict(pipeline_mode=pl.Buffered(1))
                        if single_buffer_consts else {})
        specs = [pl.BlockSpec((b_tile, d_in), lambda i: (i, 0))]
        for w, b in zip(weights, biases):
            specs.append(pl.BlockSpec(w.shape, lambda i: (0, 0), **const_kwargs))
            specs.append(pl.BlockSpec(b.shape, lambda i: (0, 0), **const_kwargs))
        return specs

    def run(single_buffer_consts):
        return pl.pallas_call(
            _make_hypernet_kernel(len(weights)),
            out_shape=jax.ShapeDtypeStruct((b_pad, out_pad), jnp.float32),
            grid=grid,
            in_specs=build_in_specs(single_buffer_consts),
            out_specs=pl.BlockSpec((b_tile, out_pad), lambda i: (i, 0)),
            compiler_params=cparams,
            cost_estimate=cost,
        )(x, *flat_args)

    try:
        out = run(True)    # single-buffer the grid-invariant weight/bias blocks
    except Exception:      # fallback for jax versions without pipeline_mode support
        out = run(False)

    out = out[:B, :out_size]
    # Tuple-of-parameter-slices split (cheap views) done outside the kernel so
    # the kernel emits one lane-dense store instead of several narrow ones.
    return tuple(out[..., s] for s in param_slices)


# --------------------------- parameter helpers ---------------------------------
def make_param_slices(param_sizes):
    ends = list(accumulate(param_sizes))
    starts = [0] + ends[:-1]
    return [slice(s, e) for s, e in zip(starts, ends)]


def init_hypernet_params(key, decoder_input_size, hidden_sizes, param_sizes):
    """Mirror Hypernet.__init__ parameter shapes (weights stored as (in, out))."""
    output_size = sum(param_sizes)
    layer_sizes = list(hidden_sizes) + [output_size]
    keys = iter(jax.random.split(key, 2 * len(layer_sizes) + 2))

    weights, biases = [], []
    # first_linear: Linear(decoder_input_size, layer_sizes[0], bias=False)
    bound0 = 1.0 / math.sqrt(decoder_input_size)
    weights.append(jax.random.uniform(next(keys),
                                      (decoder_input_size, layer_sizes[0]),
                                      jnp.float32, -bound0, bound0))
    # first_bias ~ U(-0.1, 0.1)
    biases.append(jax.random.uniform(next(keys), (1, layer_sizes[0]),
                                     jnp.float32, -0.1, 0.1))
    # linear_layers: Linear(layer_sizes[i], layer_sizes[i+1]) with bias
    for idx in range(len(layer_sizes) - 1):
        fi, fo = layer_sizes[idx], layer_sizes[idx + 1]
        bound = 1.0 / math.sqrt(fi)
        weights.append(jax.random.uniform(next(keys), (fi, fo),
                                          jnp.float32, -bound, bound))
        biases.append(jax.random.uniform(next(keys), (1, fo),
                                         jnp.float32, -bound, bound))
    return dict(weights=weights, biases=biases)


# ------------------------- pure-JAX reference ----------------------------------
def hypernet_ref(decoder_input, params, param_slices, compute_dtype=jnp.float32):
    """Reference with the same dtype policy as the kernel (bf16 MXU / f32 acc)."""
    weights = [w.astype(compute_dtype) for w in params["weights"]]
    biases = [b.astype(jnp.float32) for b in params["biases"]]
    h = jnp.dot(decoder_input.astype(compute_dtype), weights[0],
                preferred_element_type=jnp.float32) + biases[0]
    for w, b in zip(weights[1:], biases[1:]):
        h = jnp.dot(jnp.tanh(h).astype(compute_dtype), w,
                    preferred_element_type=jnp.float32) + b
    return tuple(h[..., s] for s in param_slices)


# --------------------------------- main ----------------------------------------
if __name__ == "__main__":
    B = 8
    DECODER_INPUT_SIZE = 32
    HIDDEN_SIZES = [64]            # exercises activation + hidden linear layer
    PARAM_SIZES = [16, 16, 16]     # -> (w, mu, s) heads of 16 components each

    key = jax.random.PRNGKey(0)
    kx, kp, kp_def = jax.random.split(key, 3)

    x = jax.random.normal(kx, (B, DECODER_INPUT_SIZE), jnp.float32)

    # --- config with a hidden layer ---
    slices = make_param_slices(PARAM_SIZES)
    params = init_hypernet_params(kp, DECODER_INPUT_SIZE, HIDDEN_SIZES, PARAM_SIZES)

    # exact f32 path
    out_f32 = jax.block_until_ready(
        hypernet_forward(x, params, slices, compute_dtype=jnp.float32))
    ref_f32 = hypernet_ref(x, params, slices, compute_dtype=jnp.float32)
    assert len(out_f32) == len(PARAM_SIZES)
    for o, r, sz in zip(out_f32, ref_f32, PARAM_SIZES):
        assert o.shape == (B, sz)
        assert jnp.max(jnp.abs(o - r)) < 1e-5

    # bf16 weight-streaming path (default) vs matching bf16 reference
    out_bf16 = jax.block_until_ready(hypernet_forward(x, params, slices))
    ref_bf16 = hypernet_ref(x, params, slices, compute_dtype=jnp.bfloat16)
    for o, r, sz in zip(out_bf16, ref_bf16, PARAM_SIZES):
        assert o.shape == (B, sz)
        assert jnp.max(jnp.abs(o - r)) < 2e-3

    # --- module's default config: hidden_sizes=[], param_sizes=[1, 1, 1] ---
    slices_def = make_param_slices([1, 1, 1])
    params_def = init_hypernet_params(kp_def, DECODER_INPUT_SIZE, [], [1, 1, 1])
    out_def = jax.block_until_ready(
        hypernet_forward(x, params_def, slices_def, compute_dtype=jnp.float32))
    ref_def = hypernet_ref(x, params_def, slices_def, compute_dtype=jnp.float32)
    for o, r in zip(out_def, ref_def):
        assert o.shape == (B, 1)
        assert jnp.max(jnp.abs(o - r)) < 1e-5

    print("KERNEL_OK")
</pallas_src>

<mosaic_0001>
module attributes {stable_mosaic.version = 11 : i64} {
  func.func @kernel(%arg0: i32, %arg1: memref<8x32xf32, #tpu.memory_space<vmem>>, %arg2: memref<32x64xf32, #tpu.memory_space<vmem>>, %arg3: memref<1x64xf32, #tpu.memory_space<vmem>>, %arg4: memref<64x128xf32, #tpu.memory_space<vmem>>, %arg5: memref<1x128xf32, #tpu.memory_space<vmem>>, %arg6: memref<8x128xf32, #tpu.memory_space<vmem>>) attributes {dimension_semantics = [#tpu.dimension_semantics<parallel>], iteration_bounds = array<i64: 1>, scalar_prefetch = 0 : i64, scratch_operands = 0 : i64, tpu.core_type = #tpu.core_type<tc>, window_params = [{transform_indices = @transform_0, window_bounds = array<i64: 8, 32>}, {pipeline_mode = #tpu.pipeline_mode<synchronous>, transform_indices = @transform_1, window_bounds = array<i64: 32, 64>}, {pipeline_mode = #tpu.pipeline_mode<synchronous>, transform_indices = @transform_2, window_bounds = array<i64: 1, 64>}, {pipeline_mode = #tpu.pipeline_mode<synchronous>, transform_indices = @transform_3, window_bounds = array<i64: 64, 128>}, {pipeline_mode = #tpu.pipeline_mode<synchronous>, transform_indices = @transform_4, window_bounds = array<i64: 1, 128>}, {transform_indices = @transform_5, window_bounds = array<i64: 8, 128>}]} {
    %c0 = arith.constant 0 : index
    %c0_0 = arith.constant 0 : index
    %0 = vector.load %arg2[%c0, %c0_0] : memref<32x64xf32, #tpu.memory_space<vmem>>, vector<32x64xf32>
    %c0_1 = arith.constant 0 : index
    %c0_2 = arith.constant 0 : index
    %1 = vector.load %arg1[%c0_1, %c0_2] : memref<8x32xf32, #tpu.memory_space<vmem>>, vector<8x32xf32>
    %cst = arith.constant dense<0.000000e+00> : vector<8x64xf32>
    %2 = tpu.matmul %1, %0, %cst {dimension_numbers = #tpu.dot_dimension_numbers<[1], [0], [0], [1], [0, 0, 1, 1], [], []>} : vector<8x32xf32>, vector<32x64xf32>, vector<8x64xf32> -> vector<8x64xf32>
    %c0_3 = arith.constant 0 : index
    %c0_4 = arith.constant 0 : index
    %3 = vector.load %arg3[%c0_3, %c0_4] : memref<1x64xf32, #tpu.memory_space<vmem>>, vector<1x64xf32>
    %4 = vector.broadcast %3 : vector<1x64xf32> to vector<8x64xf32>
    %5 = arith.addf %2, %4 : vector<8x64xf32>
    %c0_5 = arith.constant 0 : index
    %c0_6 = arith.constant 0 : index
    %6 = vector.load %arg4[%c0_5, %c0_6] : memref<64x128xf32, #tpu.memory_space<vmem>>, vector<64x128xf32>
    %7 = math.tanh %5 : vector<8x64xf32>
    %cst_7 = arith.constant dense<0.000000e+00> : vector<8x128xf32>
    %8 = tpu.matmul %7, %6, %cst_7 {dimension_numbers = #tpu.dot_dimension_numbers<[1], [0], [0], [1], [0, 0, 1, 1], [], []>} : vector<8x64xf32>, vector<64x128xf32>, vector<8x128xf32> -> vector<8x128xf32>
    %c0_8 = arith.constant 0 : index
    %c0_9 = arith.constant 0 : index
    %9 = vector.load %arg5[%c0_8, %c0_9] : memref<1x128xf32, #tpu.memory_space<vmem>>, vector<1x128xf32>
    %10 = vector.broadcast %9 : vector<1x128xf32> to vector<8x128xf32>
    %11 = arith.addf %8, %10 : vector<8x128xf32>
    %c0_10 = arith.constant 0 : index
    %c0_11 = arith.constant 0 : index
    %12 = vector.load %arg6[%c0_10, %c0_11] : memref<8x128xf32, #tpu.memory_space<vmem>>, vector<8x128xf32>
    tpu.vector_store %arg6[%c0_10, %c0_11], %11 {strides = array<i32>} : memref<8x128xf32, #tpu.memory_space<vmem>>, vector<8x128xf32>,
    return
  }
  func.func @transform_0(%arg0: i32) -> (i32, i32) {
    %c0_i32 = arith.constant 0 : i32
    %c0_i32_0 = arith.constant 0 : i32
    return %arg0, %c0_i32 : i32, i32
  }
  func.func @transform_1(%arg0: i32) -> (i32, i32) {
    %c0_i32 = arith.constant 0 : i32
    %c0_i32_0 = arith.constant 0 : i32
    %c0_i32_1 = arith.constant 0 : i32
    return %c0_i32, %c0_i32_0 : i32, i32
  }
  func.func @transform_2(%arg0: i32) -> (i32, i32) {
    %c0_i32 = arith.constant 0 : i32
    %c0_i32_0 = arith.constant 0 : i32
    %c0_i32_1 = arith.constant 0 : i32
    return %c0_i32, %c0_i32_0 : i32, i32
  }
  func.func @transform_3(%arg0: i32) -> (i32, i32) {
    %c0_i32 = arith.constant 0 : i32
    %c0_i32_0 = arith.constant 0 : i32
    %c0_i32_1 = arith.constant 0 : i32
    return %c0_i32, %c0_i32_0 : i32, i32
  }
  func.func @transform_4(%arg0: i32) -> (i32, i32) {
    %c0_i32 = arith.constant 0 : i32
    %c0_i32_0 = arith.constant 0 : i32
    %c0_i32_1 = arith.constant 0 : i32
    return %c0_i32, %c0_i32_0 : i32, i32
  }
  func.func @transform_5(%arg0: i32) -> (i32, i32) {
    %c0_i32 = arith.constant 0 : i32
    %c0_i32_0 = arith.constant 0 : i32
    return %arg0, %c0_i32 : i32, i32
  }
}

module attributes {stable_mosaic.version = 11 : i64} {
  func.func @kernel(%arg0: i32, %arg1: memref<8x32xf32, #tpu.memory_space<vmem>>, %arg2: memref<32x64xf32, #tpu.memory_space<vmem>>, %arg3: memref<1x64xf32, #tpu.memory_space<vmem>>, %arg4: memref<64x128xf32, #tpu.memory_space<vmem>>, %arg5: memref<1x128xf32, #tpu.memory_space<vmem>>, %arg6: memref<8x128xf32, #tpu.memory_space<vmem>>) attributes {dimension_semantics = [#tpu.dimension_semantics<parallel>], iteration_bounds = array<i64: 1>, scalar_prefetch = 0 : i64, scratch_operands = 0 : i64, tpu.core_type = #tpu.core_type<tc>, window_params = [{transform_indices = @transform_0, window_bounds = array<i64: 8, 32>}, {pipeline_mode = #tpu.pipeline_mode<synchronous>, transform_indices = @transform_1, window_bounds = array<i64: 32, 64>}, {pipeline_mode = #tpu.pipeline_mode<synchronous>, transform_indices = @transform_2, window_bounds = array<i64: 1, 64>}, {pipeline_mode = #tpu.pipeline_mode<synchronous>, transform_indices = @transform_3, window_bounds = array<i64: 64, 128>}, {pipeline_mode = #tpu.pipeline_mode<synchronous>, transform_indices = @transform_4, window_bounds = array<i64: 1, 128>}, {transform_indices = @transform_5, window_bounds = array<i64: 8, 128>}]} {
    %c0 = arith.constant 0 : index
    %c0_0 = arith.constant 0 : index
    %0 = vector.load %arg2[%c0, %c0_0] : memref<32x64xf32, #tpu.memory_space<vmem>>, vector<32x64xf32>
    %c0_1 = arith.constant 0 : index
    %c0_2 = arith.constant 0 : index
    %1 = vector.load %arg1[%c0_1, %c0_2] : memref<8x32xf32, #tpu.memory_space<vmem>>, vector<8x32xf32>
    %cst = arith.constant dense<0.000000e+00> : vector<8x64xf32>
    %2 = tpu.matmul %1, %0, %cst {dimension_numbers = #tpu.dot_dimension_numbers<[1], [0], [0], [1], [0, 0, 1, 1], [], []>} : vector<8x32xf32>, vector<32x64xf32>, vector<8x64xf32> -> vector<8x64xf32>
    %c0_3 = arith.constant 0 : index
    %c0_4 = arith.constant 0 : index
    %3 = vector.load %arg3[%c0_3, %c0_4] : memref<1x64xf32, #tpu.memory_space<vmem>>, vector<1x64xf32>
    %4 = vector.broadcast %3 : vector<1x64xf32> to vector<8x64xf32>
    %5 = arith.addf %2, %4 : vector<8x64xf32>
    %c0_5 = arith.constant 0 : index
    %c0_6 = arith.constant 0 : index
    %6 = vector.load %arg4[%c0_5, %c0_6] : memref<64x128xf32, #tpu.memory_space<vmem>>, vector<64x128xf32>
    %7 = math.tanh %5 : vector<8x64xf32>
    %cst_7 = arith.constant dense<0.000000e+00> : vector<8x128xf32>
    %8 = tpu.matmul %7, %6, %cst_7 {dimension_numbers = #tpu.dot_dimension_numbers<[1], [0], [0], [1], [0, 0, 1, 1], [], []>} : vector<8x64xf32>, vector<64x128xf32>, vector<8x128xf32> -> vector<8x128xf32>
    %c0_8 = arith.constant 0 : index
    %c0_9 = arith.constant 0 : index
    %9 = vector.load %arg5[%c0_8, %c0_9] : memref<1x128xf32, #tpu.memory_space<vmem>>, vector<1x128xf32>
    %10 = vector.broadcast %9 : vector<1x128xf32> to vector<8x128xf32>
    %11 = arith.addf %8, %10 : vector<8x128xf32>
    %c0_10 = arith.constant 0 : index
    %c0_11 = arith.constant 0 : index
    %12 = vector.load %arg6[%c0_10, %c0_11] : memref<8x128xf32, #tpu.memory_space<vmem>>, vector<8x128xf32>
    tpu.vector_store %arg6[%c0_10, %c0_11], %11 {strides = array<i32>} : memref<8x128xf32, #tpu.memory_space<vmem>>, vector<8x128xf32>,
    return
  }
  func.func @transform_0(%arg0: i32) -> (i32, i32) {
    %c0_i32 = arith.constant 0 : i32
    %c0_i32_0 = arith.constant 0 : i32
    return %arg0, %c0_i32 : i32, i32
  }
  func.func @transform_1(%arg0: i32) -> (i32, i32) {
    %c0_i32 = arith.constant 0 : i32
    %c0_i32_0 = arith.constant 0 : i32
    %c0_i32_1 = arith.constant 0 : i32
    return %c0_i32, %c0_i32_0 : i32, i32
  }
  func.func @transform_2(%arg0: i32) -> (i32, i32) {
    %c0_i32 = arith.constant 0 : i32
    %c0_i32_0 = arith.constant 0 : i32
    %c0_i32_1 = arith.constant 0 : i32
    return %c0_i32, %c0_i32_0 : i32, i32
  }
  func.func @transform_3(%arg0: i32) -> (i32, i32) {
    %c0_i32 = arith.constant 0 : i32
    %c0_i32_0 = arith.constant 0 : i32
    %c0_i32_1 = arith.constant 0 : i32
    return %c0_i32, %c0_i32_0 : i32, i32
  }
  func.func @transform_4(%arg0: i32) -> (i32, i32) {
    %c0_i32 = arith.constant 0 : i32
    %c0_i32_0 = arith.constant 0 : i32
    %c0_i32_1 = arith.constant 0 : i32
    return %c0_i32, %c0_i32_0 : i32, i32
  }
  func.func @transform_5(%arg0: i32) -> (i32, i32) {
    %c0_i32 = arith.constant 0 : i32
    %c0_i32_0 = arith.constant 0 : i32
    return %arg0, %c0_i32 : i32, i32
  }
}

</mosaic_0001>

<bundles_post_ra>
// kernel: tpu_custom_call.1
= control target key start
LH: loop header
LB: loop body
LE: loop exit
PB: predicated region body
PF: predicated region fallthrough
CT: control target
= control target key end

     0   :  { %10 = vsyncpa [#allocation3], 0  ;;  %s523_s0 = inlined_call_operand.hbm [shape: f32[8,32], index: 0, kind: input, shape index: {}]   ;;  %s524_s1 = inlined_call_operand.hbm [shape: f32[32,64], index: 1, kind: input, shape index: {}]   ;;  %s525_s2 = inlined_call_operand.vmem [shape: f32[1,64], index: 2, kind: input, shape index: {}]   ;;  %s526_s3 = inlined_call_operand.hbm [shape: f32[64,128], index: 3, kind: input, shape index: {}]   ;;  %s527_s4 = inlined_call_operand.vmem [shape: f32[1,128], index: 4, kind: input, shape index: {}]   ;;  %s528_s5 = inlined_call_operand.hbm [shape: f32[8,128], index: 5, kind: output, shape index: {}]  }
   0x1   :  { %11 = vsyncpa [#allocation6], 0 }
   0x2   :  { %12 = vsyncpa [#allocation4], 0  ;;  %s424_s18 = smov [#allocation5]   ;;  %s330_s22 = scalar_lea.hbm %s524_s1, 512 }
   0x3   :  { %s28_s19 = sshll.u32 %s424_s18, 4  ;;  %p331_p0 = scmp.ne.s32.totalorder %s524_s1, %s330_s22  ;;  %s29_s19 = int_to_ptr.vmem [resolvable:$true] %s28_s19 }
   0x4   :  { %p334_p1 = scmp.lt.u32.totalorder %s330_s22, %s524_s1 }
   0x6   :  { %p336_p2 = pnand %p334_p1, %p331_p0 }
   0x8   :  { %339 = shalt.err (!%p336_p2)
}
   0x9   :  { %s340_s27 = scalar_lea.vmem %s29_s19, 512  ;;  %p345_p4 = scmp.lt.s32.totalorder %s29_s19, %s29_s19 }
   0xa   :  { %p341_p3 = scmp.ne.s32.totalorder %s29_s19, %s340_s27  ;;  %p346_p5 = scmp.lt.s32.totalorder %s340_s27, %s340_s27 }
   0xc   :  { %p347_p6 = por %p346_p5, %p345_p4 }
   0xe   :  { %p348_p7 = pnand %p347_p6, %p341_p3 }
  0x10   :  { %351 = shalt.err (!%p348_p7)
}
  0x11   :  { %s425_s28 = smov 128   ;;  %s426_s29 = smov 8  }
  0x12   :  { %34 = dma.hbm_to_vmem [thread:$0]  %s524_s1, 512, %s29_s19, [#allocation6], %s425_s28, %s425_s28, %s426_s29  }
  0x13   :  { %s427_s7 = smov [#allocation2]   ;;  %s428_s9 = smov [#allocation7]  }
  0x14   :  { %s19_s8 = sshll.u32 %s427_s7, 4  ;;  %s42_s10 = sshll.u32 %s428_s9, 4  ;;  %s20_s8 = int_to_ptr.vmem [resolvable:$true] %s19_s8  ;;  %s43_s10 = int_to_ptr.vmem [resolvable:$true] %s42_s10 }
  0x15   :  { %s352_s13 = scalar_lea.hbm %s523_s0, 128 }
  0x16   :  { %p353_p8 = scmp.ne.s32.totalorder %s523_s0, %s352_s13  ;;  %p356_p9 = scmp.lt.u32.totalorder %s352_s13, %s523_s0 }
  0x18   :  { %p358_p10 = pnand %p356_p9, %p353_p8 }
  0x1a   :  { %361 = shalt.err (!%p358_p10)
}
  0x1b   :  { %s362_s1 = scalar_lea.vmem %s20_s8, 128  ;;  %p367_p12 = scmp.lt.s32.totalorder %s20_s8, %s20_s8 }
  0x1c   :  { %p363_p11 = scmp.ne.s32.totalorder %s20_s8, %s362_s1  ;;  %p368_p13 = scmp.lt.s32.totalorder %s362_s1, %s362_s1 }
  0x1e   :  { %p369_p0 = por %p368_p13, %p367_p12 }
  0x20   :  { %p370_p1 = pnand %p369_p0, %p363_p11 }
  0x22   :  { %373 = shalt.err (!%p370_p1)
}
  0x23   :  { %22 = dma.hbm_to_vmem [thread:$0]  %s523_s0, 128, %s20_s8, [#allocation3]  }
  0x24   :  { %s374_s22 = scalar_lea.hbm %s526_s3, 1024 }
  0x25   :  { %p375_p2 = scmp.ne.s32.totalorder %s526_s3, %s374_s22  ;;  %p378_p3 = scmp.lt.u32.totalorder %s374_s22, %s526_s3 }
  0x27   :  { %p380_p4 = pnand %p378_p3, %p375_p2 }
  0x29   :  { %383 = shalt.err (!%p380_p4)
}
  0x2a   :  { %s384_s27 = scalar_lea.vmem %s43_s10, 1024  ;;  %p389_p6 = scmp.lt.s32.totalorder %s43_s10, %s43_s10 }
  0x2b   :  { %p385_p5 = scmp.ne.s32.totalorder %s43_s10, %s384_s27  ;;  %p390_p7 = scmp.lt.s32.totalorder %s384_s27, %s384_s27 }
  0x2d   :  { %p391_p8 = por %p390_p7, %p389_p6 }
  0x2f   :  { %p392_p9 = pnand %p391_p8, %p385_p5 }
  0x31   :  { %395 = shalt.err (!%p392_p9)
}
  0x32   :  { %48 = dma.hbm_to_vmem [thread:$0]  %s526_s3, 1024, %s43_s10, [#allocation6], %s425_s28, %s425_s28, %s426_s29  }
  0x33   :  { %418 = dma.done.wait [#allocation3], 128  }
  0x34   :  { %419 = vsyncadd [#allocation3], 4294967168 }
  0x35   :  { %420 = dma.done.wait [#allocation6], 1536  }
  0x36   :  { %421 = vsyncadd [#allocation6], 4294965760  ;;  %v429_v0 = vmov 0.0|0.0   ;;  %vm430_vm0 = vmmov 0   ;;  %v431_v1 = vmov 0.0   ;;  %v60_v2 = vld [vmem:[#allocation5] sm:$0xff] }
  0x37   :  { %301 = vmatprep.subr.bf16.mxu0 %v429_v0  ;;  %279 = vmatprep.mubr.msk.f32.mxu0 %vm430_vm0, %v431_v1  ;;  %v61_v3 = vld [vmem:[#allocation5 + $0x8] sm:$0xff]  ;;  %v62_v4 = vld [vmem:[#allocation5 + $0x10] sm:$0xff]  ;;  %v63_v6 = vld [vmem:[#allocation5 + $0x18] sm:$0xff]  ;;  %vm72_vm1 = vcmask 261120   ;;  %vm162_vm2 = vcmask 523264   ;;  %s432_s7 = smov [#allocation8]  }
  0x38   :  { %307 = vmatprep.subr.bf16.mxu1 %v429_v0  ;;  %298 = vmatprep.mubr.msk.f32.mxu1 %vm430_vm0, %v431_v1  ;;  %v302_v5 = vpack.c.bf16 %v61_v3, %v60_v2  ;;  %v146_v7 = vld [vmem:[#allocation7] sm:$0xff]  ;;  %v147_v8 = vld [vmem:[#allocation7 + $0x8] sm:$0xff]  ;;  %v305_v9 = vpack.c.bf16 %v63_v6, %v62_v4  ;;  %v64_v11 = vld [vmem:[#allocation2] sm:$0xff]  ;;  %s243_s8 = sshll.u32 %s432_s7, 4  ;;  %s244_s8 = int_to_ptr.vmem [resolvable:$true] %s243_s8 }
  0x39   :  { %v308_v10 = vpack.c.bf16 %v147_v8, %v146_v7  ;;  %v148_v12 = vld [vmem:[#allocation7 + $0x10] sm:$0xff]  ;;  %v149_v13 = vld [vmem:[#allocation7 + $0x18] sm:$0xff]  ;;  %v150_v15 = vld [vmem:[#allocation7 + $0x20] sm:$0xff]  ;;  %s396_s9 = scalar_lea.vmem %s244_s8, 128  ;;  %p401_p11 = scmp.lt.s32.totalorder %s244_s8, %s244_s8 }
  0x3a   :  { %303 = vmatpush3.bf16.msra.mxu0 %v302_v5  ;;  %v311_v14 = vpack.c.bf16 %v149_v13, %v148_v12  ;;  %v151_v16 = vld [vmem:[#allocation7 + $0x28] sm:$0xff]  ;;  %v152_v18 = vld [vmem:[#allocation7 + $0x30] sm:$0xff]  ;;  %v153_v19 = vld [vmem:[#allocation7 + $0x38] sm:$0xff]  ;;  %p397_p10 = scmp.ne.s32.totalorder %s244_s8, %s396_s9  ;;  %p402_p12 = scmp.lt.s32.totalorder %s396_s9, %s396_s9 }
  0x3b   :  { %304 = vmatprep.subr.bf16.mxu0 %v429_v0  ;;  %309 = vmatpush3.bf16.msra.mxu1 %v308_v10  ;;  %v314_v17 = vpack.c.bf16 %v151_v16, %v150_v15  ;;  %v317_v20 = vpack.c.bf16 %v153_v19, %v152_v18  ;;  %v253_v21 = vld [vmem:[%s525_s2] ss:$0 sm:$0xff] }
  0x3c   :  { %310 = vmatprep.subr.bf16.mxu1 %v429_v0  ;;  %v255_v26 = vld [vmem:[%s527_s4] ss:$0 sm:$0xff]  ;;  %p403_p13 = por %p402_p12, %p401_p11 }
  0x3e   :  { %306 = vmatpush3.bf16.msra.mxu0 %v305_v9  ;;  %p404_p0 = pnand %p403_p13, %p397_p10 }
  0x3f   :  { %312 = vmatpush3.bf16.msra.mxu1 %v311_v14 }
  0x40   :  { %313 = vmatprep.subr.bf16.mxu1 %v429_v0 }
  0x41   :  { %280 = vmatmul.mubr.msk.f32.vlgmr.msra.gmra.mrb[0].mxu0 %vm72_vm1, %v64_v11 }
  0x43   :  { %315 = vmatpush3.bf16.msra.mxu1 %v314_v17 }
  0x44   :  { %316 = vmatprep.subr.bf16.mxu1 %v429_v0 }
  0x47   :  { %318 = vmatpush3.bf16.msra.mxu1 %v317_v20 }
 0x114   :  { %v142_v22 = vpop.f32.mrb[0].mxu0 }
 0x115   :  { %v143_v23 = vadd.f32 %v253_v21, %v142_v22  ;;  %v281_v24 = vpop.f32.mrb[1].mxu0 }
 0x117   :  { %328 = vtanh.f32 %v143_v23 }
 0x121   :  { %v329_v25 = vpop.eup %328 }
 0x122   :  { %299 = vmatmul.mubr.msk.f32.vlgmr.msra.gmra.mrb[0].mxu1 %vm162_vm2, %v329_v25 }
 0x1f5   :  { %v232_v27 = vpop.f32.mrb[0].mxu1 }
 0x1f6   :  { %v233_v28 = vadd.f32 %v255_v26, %v232_v27  ;;  %v300_v29 = vpop.f32.mrb[1].mxu1 }
 0x1f8   :  { %236 = vst [vmem:[#allocation8] sm:$0xff] %v233_v28 }
 0x1f9   :  { %407 = shalt.err (!%p404_p0)
}
 0x1fa   :  { %s408_s11 = scalar_lea.hbm %s528_s5, 128 }
 0x1fb   :  { %p409_p1 = scmp.ne.s32.totalorder %s528_s5, %s408_s11  ;;  %p412_p2 = scmp.lt.u32.totalorder %s408_s11, %s528_s5 }
 0x1fd   :  { %p414_p3 = pnand %p412_p2, %p409_p1 }
 0x1ff   :  { %417 = shalt.err (!%p414_p3)
}
 0x200   :  { %246 = dma.vmem_to_hbm [thread:$0]  %s244_s8, 128, %s528_s5, [#allocation4]  }
 0x201   :  { %422 = dma.done.wait [#allocation4], 128  }
 0x202   :  { %423 = vsyncadd [#allocation4], 4294967168 }
 0x203   :  { %250 = vsyncpa [#allocation3], 1 }
 0x204   :  { %251 = vsyncpa [#allocation6], 1 }
 0x205   :  { %252 = vsyncpa [#allocation4], 1 }

// kernel: tpu_custom_call.1
= control target key start
LH: loop header
LB: loop body
LE: loop exit
PB: predicated region body
PF: predicated region fallthrough
CT: control target
= control target key end

     0   :  { %10 = vsyncpa [#allocation3], 0  ;;  %s523_s0 = inlined_call_operand.hbm [shape: f32[8,32], index: 0, kind: input, shape index: {}]   ;;  %s524_s1 = inlined_call_operand.hbm [shape: f32[32,64], index: 1, kind: input, shape index: {}]   ;;  %s525_s2 = inlined_call_operand.vmem [shape: f32[1,64], index: 2, kind: input, shape index: {}]   ;;  %s526_s3 = inlined_call_operand.hbm [shape: f32[64,128], index: 3, kind: input, shape index: {}]   ;;  %s527_s4 = inlined_call_operand.vmem [shape: f32[1,128], index: 4, kind: input, shape index: {}]   ;;  %s528_s5 = inlined_call_operand.hbm [shape: f32[8,128], index: 5, kind: output, shape index: {}]  }
   0x1   :  { %11 = vsyncpa [#allocation6], 0 }
   0x2   :  { %12 = vsyncpa [#allocation4], 0  ;;  %s424_s18 = smov [#allocation5]   ;;  %s330_s22 = scalar_lea.hbm %s524_s1, 512 }
   0x3   :  { %s28_s19 = sshll.u32 %s424_s18, 4  ;;  %p331_p0 = scmp.ne.s32.totalorder %s524_s1, %s330_s22  ;;  %s29_s19 = int_to_ptr.vmem [resolvable:$true] %s28_s19 }
   0x4   :  { %p334_p1 = scmp.lt.u32.totalorder %s330_s22, %s524_s1 }
   0x6   :  { %p336_p2 = pnand %p334_p1, %p331_p0 }
   0x8   :  { %339 = shalt.err (!%p336_p2)
}
   0x9   :  { %s340_s27 = scalar_lea.vmem %s29_s19, 512  ;;  %p345_p4 = scmp.lt.s32.totalorder %s29_s19, %s29_s19 }
   0xa   :  { %p341_p3 = scmp.ne.s32.totalorder %s29_s19, %s340_s27  ;;  %p346_p5 = scmp.lt.s32.totalorder %s340_s27, %s340_s27 }
   0xc   :  { %p347_p6 = por %p346_p5, %p345_p4 }
   0xe   :  { %p348_p7 = pnand %p347_p6, %p341_p3 }
  0x10   :  { %351 = shalt.err (!%p348_p7)
}
  0x11   :  { %s425_s28 = smov 128   ;;  %s426_s29 = smov 8  }
  0x12   :  { %34 = dma.hbm_to_vmem [thread:$0]  %s524_s1, 512, %s29_s19, [#allocation6], %s425_s28, %s425_s28, %s426_s29  }
  0x13   :  { %s427_s7 = smov [#allocation2]   ;;  %s428_s9 = smov [#allocation7]  }
  0x14   :  { %s19_s8 = sshll.u32 %s427_s7, 4  ;;  %s42_s10 = sshll.u32 %s428_s9, 4  ;;  %s20_s8 = int_to_ptr.vmem [resolvable:$true] %s19_s8  ;;  %s43_s10 = int_to_ptr.vmem [resolvable:$true] %s42_s10 }
  0x15   :  { %s352_s13 = scalar_lea.hbm %s523_s0, 128 }
  0x16   :  { %p353_p8 = scmp.ne.s32.totalorder %s523_s0, %s352_s13  ;;  %p356_p9 = scmp.lt.u32.totalorder %s352_s13, %s523_s0 }
  0x18   :  { %p358_p10 = pnand %p356_p9, %p353_p8 }
  0x1a   :  { %361 = shalt.err (!%p358_p10)
}
  0x1b   :  { %s362_s1 = scalar_lea.vmem %s20_s8, 128  ;;  %p367_p12 = scmp.lt.s32.totalorder %s20_s8, %s20_s8 }
  0x1c   :  { %p363_p11 = scmp.ne.s32.totalorder %s20_s8, %s362_s1  ;;  %p368_p13 = scmp.lt.s32.totalorder %s362_s1, %s362_s1 }
  0x1e   :  { %p369_p0 = por %p368_p13, %p367_p12 }
  0x20   :  { %p370_p1 = pnand %p369_p0, %p363_p11 }
  0x22   :  { %373 = shalt.err (!%p370_p1)
}
  0x23   :  { %22 = dma.hbm_to_vmem [thread:$0]  %s523_s0, 128, %s20_s8, [#allocation3]  }
  0x24   :  { %s374_s22 = scalar_lea.hbm %s526_s3, 1024 }
  0x25   :  { %p375_p2 = scmp.ne.s32.totalorder %s526_s3, %s374_s22  ;;  %p378_p3 = scmp.lt.u32.totalorder %s374_s22, %s526_s3 }
  0x27   :  { %p380_p4 = pnand %p378_p3, %p375_p2 }
  0x29   :  { %383 = shalt.err (!%p380_p4)
}
  0x2a   :  { %s384_s27 = scalar_lea.vmem %s43_s10, 1024  ;;  %p389_p6 = scmp.lt.s32.totalorder %s43_s10, %s43_s10 }
  0x2b   :  { %p385_p5 = scmp.ne.s32.totalorder %s43_s10, %s384_s27  ;;  %p390_p7 = scmp.lt.s32.totalorder %s384_s27, %s384_s27 }
  0x2d   :  { %p391_p8 = por %p390_p7, %p389_p6 }
  0x2f   :  { %p392_p9 = pnand %p391_p8, %p385_p5 }
  0x31   :  { %395 = shalt.err (!%p392_p9)
}
  0x32   :  { %48 = dma.hbm_to_vmem [thread:$0]  %s526_s3, 1024, %s43_s10, [#allocation6], %s425_s28, %s425_s28, %s426_s29  }
  0x33   :  { %418 = dma.done.wait [#allocation3], 128  }
  0x34   :  { %419 = vsyncadd [#allocation3], 4294967168 }
  0x35   :  { %420 = dma.done.wait [#allocation6], 1536  }
  0x36   :  { %421 = vsyncadd [#allocation6], 4294965760  ;;  %v429_v0 = vmov 0.0|0.0   ;;  %vm430_vm0 = vmmov 0   ;;  %v431_v1 = vmov 0.0   ;;  %v60_v2 = vld [vmem:[#allocation5] sm:$0xff] }
  0x37   :  { %301 = vmatprep.subr.bf16.mxu0 %v429_v0  ;;  %279 = vmatprep.mubr.msk.f32.mxu0 %vm430_vm0, %v431_v1  ;;  %v61_v3 = vld [vmem:[#allocation5 + $0x8] sm:$0xff]  ;;  %v62_v4 = vld [vmem:[#allocation5 + $0x10] sm:$0xff]  ;;  %v63_v6 = vld [vmem:[#allocation5 + $0x18] sm:$0xff]  ;;  %vm72_vm1 = vcmask 261120   ;;  %vm162_vm2 = vcmask 523264   ;;  %s432_s7 = smov [#allocation8]  }
  0x38   :  { %307 = vmatprep.subr.bf16.mxu1 %v429_v0  ;;  %298 = vmatprep.mubr.msk.f32.mxu1 %vm430_vm0, %v431_v1  ;;  %v302_v5 = vpack.c.bf16 %v61_v3, %v60_v2  ;;  %v146_v7 = vld [vmem:[#allocation7] sm:$0xff]  ;;  %v147_v8 = vld [vmem:[#allocation7 + $0x8] sm:$0xff]  ;;  %v305_v9 = vpack.c.bf16 %v63_v6, %v62_v4  ;;  %v64_v11 = vld [vmem:[#allocation2] sm:$0xff]  ;;  %s243_s8 = sshll.u32 %s432_s7, 4  ;;  %s244_s8 = int_to_ptr.vmem [resolvable:$true] %s243_s8 }
  0x39   :  { %v308_v10 = vpack.c.bf16 %v147_v8, %v146_v7  ;;  %v148_v12 = vld [vmem:[#allocation7 + $0x10] sm:$0xff]  ;;  %v149_v13 = vld [vmem:[#allocation7 + $0x18] sm:$0xff]  ;;  %v150_v15 = vld [vmem:[#allocation7 + $0x20] sm:$0xff]  ;;  %s396_s9 = scalar_lea.vmem %s244_s8, 128  ;;  %p401_p11 = scmp.lt.s32.totalorder %s244_s8, %s244_s8 }
  0x3a   :  { %303 = vmatpush3.bf16.msra.mxu0 %v302_v5  ;;  %v311_v14 = vpack.c.bf16 %v149_v13, %v148_v12  ;;  %v151_v16 = vld [vmem:[#allocation7 + $0x28] sm:$0xff]  ;;  %v152_v18 = vld [vmem:[#allocation7 + $0x30] sm:$0xff]  ;;  %v153_v19 = vld [vmem:[#allocation7 + $0x38] sm:$0xff]  ;;  %p397_p10 = scmp.ne.s32.totalorder %s244_s8, %s396_s9  ;;  %p402_p12 = scmp.lt.s32.totalorder %s396_s9, %s396_s9 }
  0x3b   :  { %304 = vmatprep.subr.bf16.mxu0 %v429_v0  ;;  %309 = vmatpush3.bf16.msra.mxu1 %v308_v10  ;;  %v314_v17 = vpack.c.bf16 %v151_v16, %v150_v15  ;;  %v317_v20 = vpack.c.bf16 %v153_v19, %v152_v18  ;;  %v253_v21 = vld [vmem:[%s525_s2] ss:$0 sm:$0xff] }
  0x3c   :  { %310 = vmatprep.subr.bf16.mxu1 %v429_v0  ;;  %v255_v26 = vld [vmem:[%s527_s4] ss:$0 sm:$0xff]  ;;  %p403_p13 = por %p402_p12, %p401_p11 }
  0x3e   :  { %306 = vmatpush3.bf16.msra.mxu0 %v305_v9  ;;  %p404_p0 = pnand %p403_p13, %p397_p10 }
  0x3f   :  { %312 = vmatpush3.bf16.msra.mxu1 %v311_v14 }
  0x40   :  { %313 = vmatprep.subr.bf16.mxu1 %v429_v0 }
  0x41   :  { %280 = vmatmul.mubr.msk.f32.vlgmr.msra.gmra.mrb[0].mxu0 %vm72_vm1, %v64_v11 }
  0x43   :  { %315 = vmatpush3.bf16.msra.mxu1 %v314_v17 }
  0x44   :  { %316 = vmatprep.subr.bf16.mxu1 %v429_v0 }
  0x47   :  { %318 = vmatpush3.bf16.msra.mxu1 %v317_v20 }
 0x114   :  { %v142_v22 = vpop.f32.mrb[0].mxu0 }
 0x115   :  { %v143_v23 = vadd.f32 %v253_v21, %v142_v22  ;;  %v281_v24 = vpop.f32.mrb[1].mxu0 }
 0x117   :  { %328 = vtanh.f32 %v143_v23 }
 0x121   :  { %v329_v25 = vpop.eup %328 }
 0x122   :  { %299 = vmatmul.mubr.msk.f32.vlgmr.msra.gmra.mrb[0].mxu1 %vm162_vm2, %v329_v25 }
 0x1f5   :  { %v232_v27 = vpop.f32.mrb[0].mxu1 }
 0x1f6   :  { %v233_v28 = vadd.f32 %v255_v26, %v232_v27  ;;  %v300_v29 = vpop.f32.mrb[1].mxu1 }
 0x1f8   :  { %236 = vst [vmem:[#allocation8] sm:$0xff] %v233_v28 }
 0x1f9   :  { %407 = shalt.err (!%p404_p0)
}
 0x1fa   :  { %s408_s11 = scalar_lea.hbm %s528_s5, 128 }
 0x1fb   :  { %p409_p1 = scmp.ne.s32.totalorder %s528_s5, %s408_s11  ;;  %p412_p2 = scmp.lt.u32.totalorder %s408_s11, %s528_s5 }
 0x1fd   :  { %p414_p3 = pnand %p412_p2, %p409_p1 }
 0x1ff   :  { %417 = shalt.err (!%p414_p3)
}
 0x200   :  { %246 = dma.vmem_to_hbm [thread:$0]  %s244_s8, 128, %s528_s5, [#allocation4]  }
 0x201   :  { %422 = dma.done.wait [#allocation4], 128  }
 0x202   :  { %423 = vsyncadd [#allocation4], 4294967168 }
 0x203   :  { %250 = vsyncpa [#allocation3], 1 }
 0x204   :  { %251 = vsyncpa [#allocation6], 1 }
 0x205   :  { %252 = vsyncpa [#allocation4], 1 }

</bundles_post_ra>
